<compile_context>
chip_gen: v6e
topology: v6e:2x2x1
jax: 0.10.0
libtpu: 0.0.40
codegen_flags: <defaults>
</compile_context>

<pallas_src>
import functools

import jax
import jax.numpy as jnp
from jax.experimental import pallas as pl
from jax.experimental.pallas import tpu as pltpu


PROB_KEYS = [
    "R1_1", "R1_0", "T1_1", "T1_0",
    "R2_11", "R2_01", "R2_10", "R2_00",
    "T2_11", "T2_10", "T2_01", "T2_00",
]

_MAX_TILE_N = 32768                 # default lane-tile cap (f32: ~4 MiB slab/step)
_VMEM_BUDGET = 36 * 1024 * 1024     # per-core working-set target (fits v7x 64 MiB)
_VMEM_LIMIT = 48 * 1024 * 1024      # scoped-VMEM limit passed to the compiler


def _round_up(x, m):
    return ((x + m - 1) // m) * m


def _num_tensorcores():
    """2 on megacore chips (v4 / v5p / v7x), else 1.  Safe default is 1."""
    try:
        kind = jax.devices()[0].device_kind.lower()
    except Exception:
        return 1
    if any(tag in kind for tag in ("v4", "v5p", "7x", "v7")):
        return 2
    return 1


def _phi_pair(z, phi_name):
    """Return (phi(z), phi(-z)) with each transcendental computed once."""
    if phi_name == "logistic":
        # stable softplus: log(1 + exp(-z)) = max(-z, 0) + log1p(exp(-|z|))
        p = jnp.maximum(-z, 0.0) + jnp.log1p(jnp.exp(-jnp.abs(z)))
        return p, p + z                      # phi(-z) = z + phi(z)
    elif phi_name == "hinge":
        return jnp.maximum(1.0 - z, 0.0), jnp.maximum(1.0 + z, 0.0)
    elif phi_name == "exponential":
        return jnp.exp(-z), jnp.exp(z)
    raise ValueError("Your surrogate function doesn't exist.")


# ----------------------------------------------------------------------------
# Kernel
# ----------------------------------------------------------------------------
def joint_partial_kernel(slab_ref, w_ref, acc_ref, *, d1p, d2p, phi_name):
    """One N-tile: accumulate per-lane partial sums of R1/T1/R2/T2.

    slab_ref : (slab_rows, TN)  rows [0:d1p]   = x1^T (zero-padded)
                                rows [d1p:p0]  = x2^T with feature-0 zeroed
                                rows [p0:p0+12]= the 12 prob vectors
    w_ref    : (p0, 1) f32      rows [0:d1p] = w1, rows [d1p:p0] = w2
    acc_ref  : (8, TN) f32      rows 0..3 accumulate R1/T1/R2/T2 over the
                                trailing ('arbitrary') grid axis.
    """
    p0 = d1p + d2p

    @pl.when(pl.program_id(1) == 0)
    def _init():
        acc_ref[...] = jnp.zeros_like(acc_ref)

    w = w_ref[...]                                        # (p0, 1) f32
    w1 = w[0:d1p, :]                                      # (d1p, 1)
    w2 = w[d1p:p0, :]                                     # (d2p, 1)

    x1 = slab_ref[0:d1p, :].astype(jnp.float32)           # (d1p, TN)
    x2 = slab_ref[d1p:p0, :].astype(jnp.float32)          # (d2p, TN), row 0 zeroed

    # Tiny-D contractions on the VPU (broadcast-mul + sublane reduce).
    h1 = jnp.sum(x1 * w1, axis=0, keepdims=True)          # (1, TN)
    h20 = jnp.sum(x2 * w2, axis=0, keepdims=True)         # (1, TN)
    h21 = h20 + w[d1p:d1p + 1, 0:1]                       # x21 = x20 + e0 -> +w2[0]

    phi_h1, phi_mh1 = _phi_pair(h1, phi_name)
    phi_h20, phi_mh20 = _phi_pair(h20, phi_name)
    phi_h21, phi_mh21 = _phi_pair(h21, phi_name)

    def P(i):                                             # i-th prob row, (1, TN)
        return slab_ref[p0 + i:p0 + i + 1, :].astype(jnp.float32)

    r1 = phi_h1 * P(0) + phi_mh1 * P(1)
    t1 = phi_mh1 * P(2) + phi_h1 * P(3)
    r2 = (phi_mh1 * (phi_h21 * P(4) + phi_mh21 * P(6))
          + phi_h1 * (phi_h20 * P(5) + phi_mh20 * P(7)))
    t2 = (phi_mh1 * (phi_mh21 * P(8) + phi_h21 * P(10))
          + phi_h1 * (phi_mh20 * P(9) + phi_h20 * P(11)))

    # One full-block (unmasked) accumulator update instead of 4 masked
    # single-sublane read-modify-writes.
    zero = jnp.zeros_like(r1)
    upd = jnp.concatenate([r1, t1, r2, t2, zero, zero, zero, zero], axis=0)
    acc_ref[...] += upd


# ----------------------------------------------------------------------------
# Host-side packing (hoistable out of a w1/w2 training loop)
# ----------------------------------------------------------------------------
def pack_joint_data(x1, x2, prob_dict, *, stream_dtype=jnp.float32,
                    max_tile_n=_MAX_TILE_N, ncores=None):
    """Pack x1/x2/probs into one lane-dense slab + static metadata."""
    x1 = jnp.asarray(x1, jnp.float32)
    x2 = jnp.asarray(x2, jnp.float32)
    n, d1 = x1.shape
    _, d2 = x2.shape

    d1p = _round_up(d1, 8)
    d2p = _round_up(d2, 8)
    p0 = d1p + d2p
    slab_rows = _round_up(p0 + 12, 16)     # multiple of 16: safe for bf16 packing

    if ncores is None:
        ncores = _num_tensorcores()

    # Tile sizing: balanced blocks per core, capped by max_tile_n and VMEM.
    itemsize = jnp.dtype(stream_dtype).itemsize
    per_lane_bytes = 2 * slab_rows * itemsize + 2 * 8 * 4   # dbl-buf slab + acc
    vmem_cap = max(128, (_VMEM_BUDGET // per_lane_bytes) // 128 * 128)
    cap = max(128, min(int(max_tile_n), vmem_cap))

    per_core = _round_up(-(-n // ncores), 128)
    nblk = -(-per_core // cap)
    tile_n = _round_up(-(-per_core // nblk), 128)
    n_pad = ncores * nblk * tile_n

    probs = jnp.stack(
        [jnp.asarray(prob_dict[k], jnp.float32) for k in PROB_KEYS], axis=0)

    # Padded samples have prob == 0, so they contribute exactly 0.
    slab = jnp.zeros((slab_rows, n_pad), jnp.float32)
    slab = slab.at[:d1, :n].set(x1.T)
    slab = slab.at[d1p:d1p + d2, :n].set(x2.at[:, 0].set(0.0).T)   # col-0 zeroed
    slab = slab.at[p0:p0 + 12, :n].set(probs)
    slab = slab.astype(stream_dtype)

    meta = dict(n=n, d1=d1, d2=d2, d1p=d1p, d2p=d2p, p0=p0,
                slab_rows=slab_rows, tile_n=tile_n, nblk=nblk, ncores=ncores)
    return slab, meta


def pack_joint_weights(w1, w2, meta):
    w1 = jnp.asarray(w1, jnp.float32).reshape(-1)
    w2 = jnp.asarray(w2, jnp.float32).reshape(-1)
    wcol = jnp.zeros((meta["p0"], 1), jnp.float32)
    wcol = wcol.at[:meta["d1"], 0].set(w1)
    wcol = wcol.at[meta["d1p"]:meta["d1p"] + meta["d2"], 0].set(w2)
    return wcol


def joint_partial_sums(slab, wcol, meta, phi_name):
    """Run the Pallas kernel; return sums over all samples of [R1, T1, R2, T2]."""
    d1p, d2p, p0 = meta["d1p"], meta["d2p"], meta["p0"]
    slab_rows = meta["slab_rows"]
    tile_n, nblk, ncores = meta["tile_n"], meta["nblk"], meta["ncores"]

    kernel = functools.partial(joint_partial_kernel,
                               d1p=d1p, d2p=d2p, phi_name=phi_name)

    acc = pl.pallas_call(
        kernel,
        out_shape=jax.ShapeDtypeStruct((ncores * 8, tile_n), jnp.float32),
        grid_spec=pltpu.PrefetchScalarGridSpec(
            num_scalar_prefetch=0,
            grid=(ncores, nblk),
            in_specs=[
                # single packed data stream (x1t | x2t | probs)
                pl.BlockSpec((slab_rows, tile_n), lambda c, b: (0, c * nblk + b)),
                # [w1; w2] column: constant block -> fetched once
                pl.BlockSpec((p0, 1), lambda c, b: (0, 0)),
            ],
            out_specs=pl.BlockSpec((8, tile_n), lambda c, b: (c, 0)),
        ),
        compiler_params=pltpu.CompilerParams(
            dimension_semantics=("parallel", "arbitrary"),
            vmem_limit_bytes=_VMEM_LIMIT),
    )(slab, wcol)

    return jnp.sum(acc.reshape(ncores, 8, tile_n), axis=(0, 2))[:4]


def joint_model_forward(x1, x2, w1, w2, prob_dict, lmd1, lmd2, tau,
                        phi_name="logistic", *, stream_dtype=jnp.float32,
                        max_tile_n=_MAX_TILE_N, ncores=None):
    """Pallas implementation of JointModel.forward (returns scalar loss)."""
    slab, meta = pack_joint_data(x1, x2, prob_dict, stream_dtype=stream_dtype,
                                 max_tile_n=max_tile_n, ncores=ncores)
    wcol = pack_joint_weights(w1, w2, meta)
    sums = joint_partial_sums(slab, wcol, meta, phi_name)

    inv_n = jnp.float32(1.0 / meta["n"])
    R1, T1 = sums[0] * inv_n, sums[1] * inv_n
    R2, T2 = sums[2] * inv_n, sums[3] * inv_n
    return (R1 + R2
            + jnp.float32(lmd1) * jnp.maximum(T1 - 1.0 - jnp.float32(tau[0]), 0.0)
            + jnp.float32(lmd2) * jnp.maximum(T2 - 1.0 - jnp.float32(tau[1]), 0.0))


# ----------------------------------------------------------------------------
# Pure-JAX reference (mirrors the PyTorch forward, naive phi)
# ----------------------------------------------------------------------------
def joint_model_reference(x1, x2, w1, w2, prob_dict, lmd1, lmd2, tau,
                          phi_name="logistic"):
    if phi_name == "logistic":
        phi = lambda z: jnp.log(1.0 + jnp.exp(-z))
    elif phi_name == "hinge":
        phi = lambda z: jnp.maximum(1.0 - z, 0.0)
    elif phi_name == "exponential":
        phi = lambda z: jnp.exp(-z)
    else:
        raise ValueError("Your surrogate function doesn't exist.")

    h1 = x1 @ w1
    R1 = jnp.mean(phi(h1) * prob_dict["R1_1"] + phi(-h1) * prob_dict["R1_0"])
    T1 = jnp.mean(phi(-h1) * prob_dict["T1_1"] + phi(h1) * prob_dict["T1_0"])
    x20 = x2.at[:, 0].set(0.0)
    x21 = x2.at[:, 0].set(1.0)
    h20 = x20 @ w2
    h21 = x21 @ w2
    R2 = jnp.mean(phi(h21) * phi(-h1) * prob_dict["R2_11"]
                  + phi(h20) * phi(h1) * prob_dict["R2_01"]
                  + phi(-h21) * phi(-h1) * prob_dict["R2_10"]
                  + phi(-h20) * phi(h1) * prob_dict["R2_00"])
    T2 = jnp.mean(phi(-h21) * phi(-h1) * prob_dict["T2_11"]
                  + phi(-h20) * phi(h1) * prob_dict["T2_10"]
                  + phi(h21) * phi(-h1) * prob_dict["T2_01"]
                  + phi(h20) * phi(h1) * prob_dict["T2_00"])
    return (R1 + R2
            + lmd1 * jnp.maximum(T1 - 1.0 - tau[0], 0.0)
            + lmd2 * jnp.maximum(T2 - 1.0 - tau[1], 0.0))


if __name__ == "__main__":
    # TODO(synk): the module's pandas `.values` / nn.Parameter plumbing and the
    # eval-only acc_fair() helper are host-side and not part of the kernel.
    def make_problem(key, n, d1, d2):
        ks = jax.random.split(key, 5)
        x1 = jax.random.normal(ks[0], (n, d1), jnp.float32)
        x2 = jax.random.normal(ks[1], (n, d2), jnp.float32)
        w1 = jax.random.normal(ks[2], (d1,), jnp.float32)
        w2 = jax.random.normal(ks[3], (d2,), jnp.float32)
        pks = jax.random.split(ks[4], len(PROB_KEYS))
        pd = {k: jax.random.uniform(pk, (n,), jnp.float32)
              for k, pk in zip(PROB_KEYS, pks)}
        return x1, x2, w1, w2, pd

    key = jax.random.PRNGKey(0)
    k_small, k_big = jax.random.split(key)
    lmd1, lmd2, tau = 0.5, 0.7, [0.1, 0.2]

    # 1) Small problem (D not multiple of 8, N not multiple of 128): exercises
    #    the padding / lane-dense packing path.  f32 end to end.
    x1, x2, w1, w2, pd = make_problem(k_small, 16, 7, 5)
    got = jax.block_until_ready(
        joint_model_forward(x1, x2, w1, w2, pd, lmd1, lmd2, tau, "logistic"))
    ref = jax.block_until_ready(
        joint_model_reference(x1, x2, w1, w2, pd, lmd1, lmd2, tau, "logistic"))
    assert jnp.abs(got - ref) < 1e-4 * (1.0 + jnp.abs(ref)), (got, ref)

    # 2) Multi-block reduction path: force tiny tiles so the 'arbitrary' grid
    #    axis has several steps (exercises the resident-accumulator pattern).
    x1b, x2b, w1b, w2b, pdb = make_problem(k_big, 700, 11, 6)
    got2 = jax.block_until_ready(
        joint_model_forward(x1b, x2b, w1b, w2b, pdb, lmd1, lmd2, tau, "hinge",
                            max_tile_n=128))
    ref2 = jax.block_until_ready(
        joint_model_reference(x1b, x2b, w1b, w2b, pdb, lmd1, lmd2, tau, "hinge"))
    assert jnp.abs(got2 - ref2) < 1e-4 * (1.0 + jnp.abs(ref2)), (got2, ref2)

    # 3) Optional bf16 streaming (halves HBM traffic on a memory-bound kernel);
    #    validated against a reference fed the same bf16-rounded data so the
    #    check isolates the kernel itself (weights & accumulation stay f32).
    q = lambda a: jnp.asarray(a, jnp.bfloat16).astype(jnp.float32)
    got3 = jax.block_until_ready(
        joint_model_forward(x1, x2, w1, w2, pd, lmd1, lmd2, tau, "logistic",
                            stream_dtype=jnp.bfloat16))
    ref3 = jax.block_until_ready(
        joint_model_reference(q(x1), q(x2), w1, w2,
                              {k: q(v) for k, v in pd.items()},
                              lmd1, lmd2, tau, "logistic"))
    assert jnp.abs(got3 - ref3) < 1e-4 * (1.0 + jnp.abs(ref3)), (got3, ref3)

    print("KERNEL_OK")
</pallas_src>

<mosaic_0001>
module attributes {stable_mosaic.version = 11 : i64} {
  func.func @joint_partial_kernel(%arg0: i32, %arg1: i32, %arg2: memref<32x128xf32, #tpu.memory_space<vmem>>, %arg3: memref<16x1xf32, #tpu.memory_space<vmem>>, %arg4: memref<8x128xf32, #tpu.memory_space<vmem>>) attributes {dimension_semantics = [#tpu.dimension_semantics<parallel>, #tpu.dimension_semantics<arbitrary>], iteration_bounds = array<i64: 1, 1>, scalar_prefetch = 0 : i64, scratch_operands = 0 : i64, tpu.core_type = #tpu.core_type<tc>, window_params = [{transform_indices = @transform_0, window_bounds = array<i64: 32, 128>}, {pipeline_mode = #tpu.pipeline_mode<synchronous>, transform_indices = @transform_1, window_bounds = array<i64: 16, 1>}, {transform_indices = @transform_2, window_bounds = array<i64: 8, 128>}]} {
    %c0_i32 = arith.constant 0 : i32
    %0 = arith.cmpi eq, %arg1, %c0_i32 : i32
    %1 = arith.extui %0 : i1 to i32
    %c0_i32_0 = arith.constant 0 : i32
    %2 = arith.cmpi ne, %1, %c0_i32_0 : i32
    scf.if %2 {
      %cst_32 = arith.constant 0.000000e+00 : f32
      %93 = vector.broadcast %cst_32 : f32 to vector<8x128xf32>
      %c0_33 = arith.constant 0 : index
      %c0_34 = arith.constant 0 : index
      %94 = vector.load %arg4[%c0_33, %c0_34] : memref<8x128xf32, #tpu.memory_space<vmem>>, vector<8x128xf32>
      tpu.vector_store %arg4[%c0_33, %c0_34], %93 {strides = array<i32>} : memref<8x128xf32, #tpu.memory_space<vmem>>, vector<8x128xf32>,
    } else {
    }
    %c0 = arith.constant 0 : index
    %c0_1 = arith.constant 0 : index
    %3 = vector.load %arg3[%c0, %c0_1] : memref<16x1xf32, #tpu.memory_space<vmem>>, vector<16x1xf32>
    %4 = vector.extract_strided_slice %3 {offsets = [0, 0], sizes = [8, 1], strides = [1, 1]} : vector<16x1xf32> to vector<8x1xf32>
    %5 = vector.extract_strided_slice %3 {offsets = [8, 0], sizes = [8, 1], strides = [1, 1]} : vector<16x1xf32> to vector<8x1xf32>
    %c0_2 = arith.constant 0 : index
    %c0_3 = arith.constant 0 : index
    %6 = vector.load %arg2[%c0_2, %c0_3] : memref<32x128xf32, #tpu.memory_space<vmem>>, vector<8x128xf32>
    %c8 = arith.constant 8 : index
    %c0_4 = arith.constant 0 : index
    %7 = vector.load %arg2[%c8, %c0_4] : memref<32x128xf32, #tpu.memory_space<vmem>>, vector<8x128xf32>
    %8 = vector.broadcast %4 : vector<8x1xf32> to vector<8x128xf32>
    %9 = arith.mulf %6, %8 : vector<8x128xf32>
    %cst = arith.constant dense<0.000000e+00> : vector<128xf32>
    %10 = vector.multi_reduction <add>, %9, %cst [0] : vector<8x128xf32> to vector<128xf32>
    %11 = vector.shape_cast %10 : vector<128xf32> to vector<1x128xf32>
    %12 = vector.broadcast %5 : vector<8x1xf32> to vector<8x128xf32>
    %13 = arith.mulf %7, %12 : vector<8x128xf32>
    %cst_5 = arith.constant dense<0.000000e+00> : vector<128xf32>
    %14 = vector.multi_reduction <add>, %13, %cst_5 [0] : vector<8x128xf32> to vector<128xf32>
    %15 = vector.shape_cast %14 : vector<128xf32> to vector<1x128xf32>
    %16 = vector.extract_strided_slice %3 {offsets = [8, 0], sizes = [1, 1], strides = [1, 1]} : vector<16x1xf32> to vector<1x1xf32>
    %17 = vector.broadcast %16 : vector<1x1xf32> to vector<1x128xf32>
    %18 = arith.addf %15, %17 : vector<1x128xf32>
    %cst_6 = arith.constant 0.000000e+00 : f32
    %19 = vector.broadcast %cst_6 : f32 to vector<1x128xf32>
    %20 = arith.subf %19, %11 : vector<1x128xf32>
    %cst_7 = arith.constant 0.000000e+00 : f32
    %21 = vector.broadcast %cst_7 : f32 to vector<1x128xf32>
    %22 = arith.maximumf %20, %21 : vector<1x128xf32>
    %23 = math.absf %11 : vector<1x128xf32>
    %cst_8 = arith.constant 0.000000e+00 : f32
    %24 = vector.broadcast %cst_8 : f32 to vector<1x128xf32>
    %25 = arith.subf %24, %23 : vector<1x128xf32>
    %26 = math.exp %25 : vector<1x128xf32>
    %27 = math.log1p %26 : vector<1x128xf32>
    %28 = arith.addf %22, %27 : vector<1x128xf32>
    %29 = arith.addf %28, %11 : vector<1x128xf32>
    %cst_9 = arith.constant 0.000000e+00 : f32
    %30 = vector.broadcast %cst_9 : f32 to vector<1x128xf32>
    %31 = arith.subf %30, %15 : vector<1x128xf32>
    %cst_10 = arith.constant 0.000000e+00 : f32
    %32 = vector.broadcast %cst_10 : f32 to vector<1x128xf32>
    %33 = arith.maximumf %31, %32 : vector<1x128xf32>
    %34 = math.absf %15 : vector<1x128xf32>
    %cst_11 = arith.constant 0.000000e+00 : f32
    %35 = vector.broadcast %cst_11 : f32 to vector<1x128xf32>
    %36 = arith.subf %35, %34 : vector<1x128xf32>
    %37 = math.exp %36 : vector<1x128xf32>
    %38 = math.log1p %37 : vector<1x128xf32>
    %39 = arith.addf %33, %38 : vector<1x128xf32>
    %40 = arith.addf %39, %15 : vector<1x128xf32>
    %cst_12 = arith.constant 0.000000e+00 : f32
    %41 = vector.broadcast %cst_12 : f32 to vector<1x128xf32>
    %42 = arith.subf %41, %18 : vector<1x128xf32>
    %cst_13 = arith.constant 0.000000e+00 : f32
    %43 = vector.broadcast %cst_13 : f32 to vector<1x128xf32>
    %44 = arith.maximumf %42, %43 : vector<1x128xf32>
    %45 = math.absf %18 : vector<1x128xf32>
    %cst_14 = arith.constant 0.000000e+00 : f32
    %46 = vector.broadcast %cst_14 : f32 to vector<1x128xf32>
    %47 = arith.subf %46, %45 : vector<1x128xf32>
    %48 = math.exp %47 : vector<1x128xf32>
    %49 = math.log1p %48 : vector<1x128xf32>
    %50 = arith.addf %44, %49 : vector<1x128xf32>
    %51 = arith.addf %50, %18 : vector<1x128xf32>
    %c16 = arith.constant 16 : index
    %c0_15 = arith.constant 0 : index
    %52 = vector.load %arg2[%c16, %c0_15] : memref<32x128xf32, #tpu.memory_space<vmem>>, vector<1x128xf32>
    %53 = arith.mulf %28, %52 : vector<1x128xf32>
    %c17 = arith.constant 17 : index
    %c0_16 = arith.constant 0 : index
    %54 = vector.load %arg2[%c17, %c0_16] : memref<32x128xf32, #tpu.memory_space<vmem>>, vector<1x128xf32>
    %55 = arith.mulf %29, %54 : vector<1x128xf32>
    %56 = arith.addf %53, %55 : vector<1x128xf32>
    %c18 = arith.constant 18 : index
    %c0_17 = arith.constant 0 : index
    %57 = vector.load %arg2[%c18, %c0_17] : memref<32x128xf32, #tpu.memory_space<vmem>>, vector<1x128xf32>
    %58 = arith.mulf %29, %57 : vector<1x128xf32>
    %c19 = arith.constant 19 : index
    %c0_18 = arith.constant 0 : index
    %59 = vector.load %arg2[%c19, %c0_18] : memref<32x128xf32, #tpu.memory_space<vmem>>, vector<1x128xf32>
    %60 = arith.mulf %28, %59 : vector<1x128xf32>
    %61 = arith.addf %58, %60 : vector<1x128xf32>
    %c20 = arith.constant 20 : index
    %c0_19 = arith.constant 0 : index
    %62 = vector.load %arg2[%c20, %c0_19] : memref<32x128xf32, #tpu.memory_space<vmem>>, vector<1x128xf32>
    %63 = arith.mulf %50, %62 : vector<1x128xf32>
    %c22 = arith.constant 22 : index
    %c0_20 = arith.constant 0 : index
    %64 = vector.load %arg2[%c22, %c0_20] : memref<32x128xf32, #tpu.memory_space<vmem>>, vector<1x128xf32>
    %65 = arith.mulf %51, %64 : vector<1x128xf32>
    %66 = arith.addf %63, %65 : vector<1x128xf32>
    %67 = arith.mulf %29, %66 : vector<1x128xf32>
    %c21 = arith.constant 21 : index
    %c0_21 = arith.constant 0 : index
    %68 = vector.load %arg2[%c21, %c0_21] : memref<32x128xf32, #tpu.memory_space<vmem>>, vector<1x128xf32>
    %69 = arith.mulf %39, %68 : vector<1x128xf32>
    %c23 = arith.constant 23 : index
    %c0_22 = arith.constant 0 : index
    %70 = vector.load %arg2[%c23, %c0_22] : memref<32x128xf32, #tpu.memory_space<vmem>>, vector<1x128xf32>
    %71 = arith.mulf %40, %70 : vector<1x128xf32>
    %72 = arith.addf %69, %71 : vector<1x128xf32>
    %73 = arith.mulf %28, %72 : vector<1x128xf32>
    %74 = arith.addf %67, %73 : vector<1x128xf32>
    %c24 = arith.constant 24 : index
    %c0_23 = arith.constant 0 : index
    %75 = vector.load %arg2[%c24, %c0_23] : memref<32x128xf32, #tpu.memory_space<vmem>>, vector<1x128xf32>
    %76 = arith.mulf %51, %75 : vector<1x128xf32>
    %c26 = arith.constant 26 : index
    %c0_24 = arith.constant 0 : index
    %77 = vector.load %arg2[%c26, %c0_24] : memref<32x128xf32, #tpu.memory_space<vmem>>, vector<1x128xf32>
    %78 = arith.mulf %50, %77 : vector<1x128xf32>
    %79 = arith.addf %76, %78 : vector<1x128xf32>
    %80 = arith.mulf %29, %79 : vector<1x128xf32>
    %c25 = arith.constant 25 : index
    %c0_25 = arith.constant 0 : index
    %81 = vector.load %arg2[%c25, %c0_25] : memref<32x128xf32, #tpu.memory_space<vmem>>, vector<1x128xf32>
    %82 = arith.mulf %40, %81 : vector<1x128xf32>
    %c27 = arith.constant 27 : index
    %c0_26 = arith.constant 0 : index
    %83 = vector.load %arg2[%c27, %c0_26] : memref<32x128xf32, #tpu.memory_space<vmem>>, vector<1x128xf32>
    %84 = arith.mulf %39, %83 : vector<1x128xf32>
    %85 = arith.addf %82, %84 : vector<1x128xf32>
    %86 = arith.mulf %28, %85 : vector<1x128xf32>
    %87 = arith.addf %80, %86 : vector<1x128xf32>
    %cst_27 = arith.constant 0.000000e+00 : f32
    %88 = vector.broadcast %cst_27 : f32 to vector<1x128xf32>
    %89 = tpu.concatenate %56, %61, %74, %87, %88, %88, %88, %88 in 0 : vector<1x128xf32>, vector<1x128xf32>, vector<1x128xf32>, vector<1x128xf32>, vector<1x128xf32>, vector<1x128xf32>, vector<1x128xf32>, vector<1x128xf32> -> vector<8x128xf32>
    %c0_28 = arith.constant 0 : index
    %c0_29 = arith.constant 0 : index
    %90 = vector.load %arg4[%c0_28, %c0_29] : memref<8x128xf32, #tpu.memory_space<vmem>>, vector<8x128xf32>
    %91 = arith.addf %90, %89 : vector<8x128xf32>
    %c0_30 = arith.constant 0 : index
    %c0_31 = arith.constant 0 : index
    %92 = vector.load %arg4[%c0_30, %c0_31] : memref<8x128xf32, #tpu.memory_space<vmem>>, vector<8x128xf32>
    tpu.vector_store %arg4[%c0_30, %c0_31], %91 {strides = array<i32>} : memref<8x128xf32, #tpu.memory_space<vmem>>, vector<8x128xf32>,
    return
  }
  func.func @transform_0(%arg0: i32, %arg1: i32) -> (i32, i32) {
    %c1_i32 = arith.constant 1 : i32
    %0 = arith.muli %arg0, %c1_i32 : i32
    %1 = arith.addi %0, %arg1 : i32
    %c0_i32 = arith.constant 0 : i32
    %c0_i32_0 = arith.constant 0 : i32
    return %c0_i32, %1 : i32, i32
  }
  func.func @transform_1(%arg0: i32, %arg1: i32) -> (i32, i32) {
    %c0_i32 = arith.constant 0 : i32
    %c0_i32_0 = arith.constant 0 : i32
    %c0_i32_1 = arith.constant 0 : i32
    return %c0_i32, %c0_i32_0 : i32, i32
  }
  func.func @transform_2(%arg0: i32, %arg1: i32) -> (i32, i32) {
    %c0_i32 = arith.constant 0 : i32
    %c0_i32_0 = arith.constant 0 : i32
    return %arg0, %c0_i32 : i32, i32
  }
}

</mosaic_0001>

<bundles_post_ra>
// kernel: tpu_custom_call.1
= control target key start
LH: loop header
LB: loop body
LE: loop exit
PB: predicated region body
PF: predicated region fallthrough
CT: control target
= control target key end

     0   :  { %7 = vsyncpa [#allocation3], 0  ;;  %s297_s0 = inlined_call_operand.hbm [shape: f32[32,128], index: 0, kind: input, shape index: {}]   ;;  %s298_s1 = inlined_call_operand.vmem [shape: f32[16,1], index: 1, kind: input, shape index: {}]   ;;  %s299_s2 = inlined_call_operand.hbm [shape: f32[8,128], index: 2, kind: output, shape index: {}]  }
   0x1   :  { %8 = vsyncpa [#allocation4], 0  ;;  %s255_s9 = smov [#allocation2]  }
   0x2   :  { %s17_s10 = sshll.u32 %s255_s9, 4  ;;  %s18_s10 = int_to_ptr.vmem [resolvable:$true] %s17_s10 }
   0x3   :  { %s219_s11 = scalar_lea.vmem %s18_s10, 512  ;;  %p224_p1 = scmp.lt.s32.totalorder %s18_s10, %s18_s10 }
   0x4   :  { %p220_p0 = scmp.ne.s32.totalorder %s18_s10, %s219_s11  ;;  %p225_p2 = scmp.lt.s32.totalorder %s219_s11, %s219_s11 }
   0x6   :  { %p226_p3 = por %p225_p2, %p224_p1 }
   0x8   :  { %p227_p4 = pnand %p226_p3, %p220_p0 }
   0xa   :  { %230 = shalt.err (!%p227_p4)
}
   0xb   :  { %s256_s12 = smov 128   ;;  %s257_s13 = smov 8  }
   0xc   :  { %23 = dma.hbm_to_vmem [thread:$0]  %s297_s0, 512, %s18_s10, [#allocation3], %s256_s12, %s256_s12, %s257_s13  }
   0xd   :  { %251 = dma.done.wait [#allocation3], 512  }
   0xe   :  { %252 = vsyncadd [#allocation3], 4294966784  ;;  %v258_v0 = vmov 0   ;;  %v36_v1 = vld [vmem:[%s298_s1 + $0x8] sm:$0xff]  ;;  %v35_v2 = vld [vmem:[%s298_s1] sm:$0xff]  ;;  %vm160_vm3 = vcmask 1040384  }
   0xf   :  { %198 = vset.pattern.permute.xlu0 %v258_v0  ;;  %v38_v3 = vld [vmem:[#allocation2 + $0x8] sm:$0xff]  ;;  %v37_v6 = vld [vmem:[#allocation2] sm:$0xff]  ;;  %v125_v57 = vld [vmem:[#allocation2 + $0x14] sm:$0x1]  ;;  %vm162_vm4 = vcmask 1041408   ;;  %vm164_vm5 = vcmask 1042432  }
  0x10   :  { %53 = vperm.xlu0 %198, %v36_v1   ;;  %v127_v61 = vld [vmem:[#allocation2 + $0x16] sm:$0x1]  ;;  %v131_v62 = vld [vmem:[#allocation2 + $0x15] sm:$0x1]  ;;  %v133_v63 = vld [vmem:[#allocation2 + $0x17] sm:$0x1] }
  0x11   :  { %v146_v0 = vld [vmem:[#allocation2 + $0x1b] sm:$0x1]  ;;  %vm166_vm6 = vcmask 1043456   ;;  %vm168_vm7 = vcmask 1044480   ;;  %vm170_vm8 = vcmask 1045504   ;;  %vm172_vm9 = vcmask 1046528  }
  0x12   :  { %s259_s0 = smov [#allocation5]  }
  0x13   :  { %s183_s1 = sshll.u32 %s259_s0, 4  ;;  %s184_s1 = int_to_ptr.vmem [resolvable:$true] %s183_s1 }
  0x14   :  { %41 = vperm.xlu0 %198, %v35_v2   ;;  %v138_v2 = vld [vmem:[#allocation2 + $0x18] sm:$0x1]  ;;  %s231_s20 = scalar_lea.vmem %s184_s1, 128  ;;  %p236_p6 = scmp.lt.s32.totalorder %s184_s1, %s184_s1 }
  0x15   :  { %p232_p5 = scmp.ne.s32.totalorder %s184_s1, %s231_s20  ;;  %p237_p7 = scmp.lt.s32.totalorder %s231_s20, %s231_s20 }
  0x17   :  { %p238_p8 = por %p237_p7, %p236_p6 }
  0x19   :  { %p239_p9 = pnand %p238_p8, %p232_p5 }
  0x8b   :  { %v54_v4 = vpop.permute.xlu0 %53 }
  0x8c   :  { %v56_v5 = vmul.f32 %v54_v4, %v38_v3  ;;  %v140_v3 = vld [vmem:[#allocation2 + $0x1a] sm:$0x1] }
  0x8e   :  { %v57_v7 = vrot.slane %v56_v5, 4 }
  0x8f   :  { %v42_v8 = vpop.permute.xlu0 %41 }
  0x90   :  { %v58_v9 = vadd.f32 %v57_v7, %v56_v5  ;;  %v44_v10 = vmul.f32 %v42_v8, %v37_v6 }
  0x92   :  { %v59_v11 = vrot.slane %v58_v9, 2  ;;  %v45_v12 = vrot.slane %v44_v10, 4 }
  0x94   :  { %v60_v13 = vadd.f32 %v59_v11, %v58_v9  ;;  %v46_v14 = vadd.f32 %v45_v12, %v44_v10 }
  0x96   :  { %v61_v15 = vrot.slane %v60_v13, 1  ;;  %v47_v16 = vrot.slane %v46_v14, 2 }
  0x98   :  { %v62_v17 = vadd.f32 %v61_v15, %v60_v13  ;;  %v48_v18 = vadd.f32 %v47_v16, %v46_v14 }
  0x9a   :  { %v284_v19 = vadd.f32 %v62_v17, %v54_v4  ;;  %v83_v20 = vand.u32 2147483647, %v62_v17  ;;  %v49_v21 = vrot.slane %v48_v18, 1  ;;  %v81_v40 = vsub.f32 0.0, %v62_v17  ;;  %v144_v4 = vld [vmem:[#allocation2 + $0x19] sm:$0x1] }
  0x9c   :  { %v84_v22 = vsub.f32 0.0, %v83_v20  ;;  %v100_v23 = vand.u32 2147483647, %v284_v19  ;;  %v287_v24 = vadd.f32 %v49_v21, %v48_v18  ;;  %v98_v45 = vsub.f32 0.0, %v284_v19 }
  0x9d   :  { %v82_v50 = vmax.f32 %v81_v40, 0.0 }
  0x9e   :  { %v85_v25 = vmul.f32 1.442695, %v84_v22  ;;  %v101_v26 = vsub.f32 0.0, %v100_v23  ;;  %v66_v27 = vand.u32 2147483647, %v287_v24  ;;  %v64_v51 = vsub.f32 0.0, %v287_v24 }
  0x9f   :  { %v99_v59 = vmax.f32 %v98_v45, 0.0  ;;  %v122_v23 = vld [vmem:[#allocation2 + $0x13] sm:$0x1] }
  0xa0   :  { %199 = vpow2.f32 %v85_v25  ;;  %v102_v28 = vmul.f32 1.442695, %v101_v26  ;;  %v67_v29 = vsub.f32 0.0, %v66_v27  ;;  %v65_v7 = vmax.f32 %v64_v51, 0.0  ;;  %v117_v26 = vld [vmem:[#allocation2 + $0x11] sm:$0x1] }
  0xa1   :  { %v120_v27 = vld [vmem:[#allocation2 + $0x12] sm:$0x1] }
  0xa2   :  { %201 = vpow2.f32 %v102_v28  ;;  %v68_v30 = vmul.f32 1.442695, %v67_v29 }
  0xa4   :  { %203 = vpow2.f32 %v68_v30 }
  0xad   :  { %v200_v31 = vpop.eup %199 }
  0xae   :  { %v87_v32 = vadd.f32 1.0, %v200_v31  ;;  %v90_v37 = vmul.f32 -0.5, %v200_v31  ;;  %v93_v41 = vand.u32 2147483647, %v200_v31 }
  0xaf   :  { %v202_v33 = vpop.eup %201 }
  0xb0   :  { %205 = vlog2.f32 %v87_v32  ;;  %v104_v34 = vadd.f32 1.0, %v202_v33  ;;  %v107_v38 = vmul.f32 -0.5, %v202_v33  ;;  %v91_v39 = vadd.f32 1.0, %v90_v37 }
  0xb1   :  { %v204_v35 = vpop.eup %203  ;;  %v110_v46 = vand.u32 2147483647, %v202_v33  ;;  %vm94_vm0 = vcmp.lt.f32.partialorder %v93_v41, 0.0004427343 }
  0xb2   :  { %207 = vlog2.f32 %v104_v34  ;;  %v70_v36 = vadd.f32 1.0, %v204_v35  ;;  %v108_v42 = vadd.f32 1.0, %v107_v38  ;;  %v73_v43 = vmul.f32 -0.5, %v204_v35 }
  0xb3   :  { %v92_v48 = vmul.f32 %v200_v31, %v91_v39  ;;  %v76_v52 = vand.u32 2147483647, %v204_v35  ;;  %vm111_vm1 = vcmp.lt.f32.partialorder %v110_v46, 0.0004427343  ;;  %v115_v31 = vld [vmem:[#allocation2 + $0x10] sm:$0x1] }
  0xb4   :  { %209 = vlog2.f32 %v70_v36  ;;  %v109_v55 = vmul.f32 %v202_v33, %v108_v42  ;;  %v74_v56 = vadd.f32 1.0, %v73_v43 }
  0xb5   :  { %vm77_vm2 = vcmp.lt.f32.partialorder %v76_v52, 0.0004427343 }
  0xb6   :  { %v75_v9 = vmul.f32 %v204_v35, %v74_v56 }
  0xbd   :  { %v206_v44 = vpop.eup %205 }
  0xbe   :  { %v89_v47 = vmul.f32 0.6931472, %v206_v44 }
  0xbf   :  { %v208_v49 = vpop.eup %207 }
  0xc0   :  { %v95_v53 = vsel %vm94_vm0, %v92_v48, %v89_v47  ;;  %v106_v54 = vmul.f32 0.6931472, %v208_v49 }
  0xc1   :  { %v96_v58 = vadd.f32 %v95_v53, %v82_v50  ;;  %v210_v60 = vpop.eup %209 }
  0xc2   :  { %v112_v1 = vsel %vm111_vm1, %v109_v55, %v106_v54  ;;  %v72_v8 = vmul.f32 0.6931472, %v210_v60 }
  0xc3   :  { %v97_v5 = vadd.f32 %v96_v58, %v62_v17  ;;  %v113_v6 = vadd.f32 %v112_v1, %v99_v59  ;;  %v132_v11 = vmul.f32 %v131_v62, %v96_v58  ;;  %v147_v13 = vmul.f32 %v146_v0, %v96_v58 }
  0xc4   :  { %v78_v18 = vsel %vm77_vm2, %v75_v9, %v72_v8 }
  0xc5   :  { %v114_v10 = vadd.f32 %v113_v6, %v284_v19  ;;  %v134_v12 = vmul.f32 %v133_v63, %v97_v5  ;;  %v126_v14 = vmul.f32 %v125_v57, %v113_v6  ;;  %v141_v15 = vmul.f32 %v140_v3, %v113_v6 }
  0xc6   :  { %v145_v16 = vmul.f32 %v144_v4, %v97_v5  ;;  %v79_v25 = vadd.f32 %v78_v18, %v65_v7 }
  0xc7   :  { %v128_v20 = vmul.f32 %v127_v61, %v114_v10  ;;  %v135_v21 = vadd.f32 %v134_v12, %v132_v11  ;;  %v139_v22 = vmul.f32 %v138_v2, %v114_v10 }
  0xc8   :  { %v148_v17 = vadd.f32 %v147_v13, %v145_v16  ;;  %v80_v30 = vadd.f32 %v79_v25, %v287_v24  ;;  %v123_v19 = vmul.f32 %v122_v23, %v79_v25  ;;  %v116_v39 = vmul.f32 %v115_v31, %v79_v25 }
  0xc9   :  { %v129_v28 = vadd.f32 %v128_v20, %v126_v14  ;;  %v142_v29 = vadd.f32 %v141_v15, %v139_v22  ;;  %v136_v32 = vmul.f32 %v135_v21, %v79_v25 }
  0xca   :  { %v149_v33 = vmul.f32 %v148_v17, %v79_v25  ;;  %v118_v34 = vmul.f32 %v117_v26, %v80_v30  ;;  %v121_v35 = vmul.f32 %v120_v27, %v80_v30 }
  0xcb   :  { %v130_v36 = vmul.f32 %v129_v28, %v80_v30  ;;  %v143_v37 = vmul.f32 %v142_v29, %v80_v30 }
  0xcc   :  { %v124_v38 = vadd.f32 %v123_v19, %v121_v35  ;;  %v119_v42 = vadd.f32 %v118_v34, %v116_v39 }
  0xcd   :  { %v137_v40 = vadd.f32 %v136_v32, %v130_v36  ;;  %v150_v41 = vadd.f32 %v149_v33, %v143_v37 }
  0xce   :  { %v152_v43 = vrot.slane %v124_v38, 7 }
  0xcf   :  { %v155_v44 = vrot.slane %v137_v40, 6  ;;  %v158_v45 = vrot.slane %v150_v41, 5 }
  0xd0   :  { %v161_v24 = vsel %vm160_vm3, %v119_v42, %v152_v43 }
  0xd1   :  { %v163_v46 = vsel %vm162_vm4, %v161_v24, %v155_v44 }
  0xd2   :  { %v165_v47 = vsel %vm164_vm5, %v163_v46, %v158_v45 }
  0xd3   :  { %v167_v48 = vsel %vm166_vm6, %v165_v47, 0.0 }
  0xd4   :  { %v169_v49 = vsel %vm168_vm7, %v167_v48, 0.0 }
  0xd5   :  { %v171_v50 = vsel %vm170_vm8, %v169_v49, 0.0 }
  0xd6   :  { %v173_v51 = vsel %vm172_vm9, %v171_v50, 0.0 }
  0xd7   :  { %176 = vst [vmem:[#allocation5] sm:$0xff] %v173_v51 }
  0xd8   :  { %242 = shalt.err (!%p239_p9)
}
  0xd9   :  { %186 = dma.vmem_to_hbm [thread:$0]  %s184_s1, 128, %s299_s2, [#allocation4]  }
  0xda   :  { %253 = dma.done.wait [#allocation4], 128  }
  0xdb   :  { %254 = vsyncadd [#allocation4], 4294967168 }
  0xdc   :  { %190 = vsyncpa [#allocation3], 1 }
  0xdd   :  { %191 = vsyncpa [#allocation4], 1 }

</bundles_post_ra>
